<compile_context>
chip_gen: v7x
topology: tpu7x:2x2x1
jax: 0.10.0
libtpu: 0.0.40
codegen_flags: <defaults>
</compile_context>

<pallas_src>
import jax
import jax.numpy as jnp
from jax.experimental import pallas as pl
from jax.experimental.pallas import tpu as pltpu


# ----------------------------- kernel ---------------------------------------

def _silu(x):
    return x * jax.nn.sigmoid(x)


def _make_prior_block_kernel(n_hidden):
    """Fused PriorBlock forward (c_dim=None path of `Block`)."""

    def kernel(h_ref, eps_ref,
               qw_in, qb_in, qw_hid, qb_hid, qw_mu, qb_mu, qw_lv, qb_lv,
               wz, bz,
               ow_in, ob_in, ow_hid, ob_hid, ow_out, ob_out,
               z_ref, kl_ref):

        def mxu(x_f32, w_bf16):
            # bf16 x bf16 -> f32 accumulate on the MXU.
            return jnp.dot(x_f32.astype(jnp.bfloat16), w_bf16,
                           preferred_element_type=jnp.float32)

        h = h_ref[...]                                    # (B, h_dim) f32

        # ---- q_block (residual=False): h -> 2*z_dim, fc_out split mu/lv ----
        t = _silu(mxu(h, qw_in[...]) + qb_in[...])
        for k in range(n_hidden):                         # static unrolled
            t = _silu(mxu(t, qw_hid[k]) + qb_hid[k])
        q_mu = _silu(mxu(t, qw_mu[...]) + qb_mu[...])     # (B, z_dim)
        q_lv = _silu(mxu(t, qw_lv[...]) + qb_lv[...])     # (B, z_dim)

        # ---- reparametrization + fc_z (all in-kernel, f32 elementwise) -----
        z_s = q_mu + jnp.exp(0.5 * q_lv) * eps_ref[...]
        z_in = mxu(z_s, wz[...]) + bz[...]                # (B, z_dim)

        # ---- out_block (residual=True): z_dim -> z_dim ----------------------
        t = _silu(mxu(z_in, ow_in[...]) + ob_in[...])
        for k in range(n_hidden):
            t = _silu(mxu(t, ow_hid[k]) + ob_hid[k])
        o = _silu(mxu(t, ow_out[...]) + ob_out[...])
        z_ref[...] = _silu(o + z_in)

        # ---- analytical KL against N(0, I) ----------------------------------
        # General form uses exp(-p_logvar); with p_mu = p_logvar = 0 it
        # simplifies to 0.5 * (exp(q_lv) + q_mu^2 - 1 - q_lv).
        kl = 0.5 * (jnp.exp(q_lv) + q_mu * q_mu - 1.0 - q_lv)
        kl_ref[0, 0] = jnp.sum(kl, axis=(0, 1))           # scalar -> SMEM

    return kernel


def prior_block_forward(params, h, eps):
    """Single fused pallas_call implementing PriorBlock.forward(h)."""
    B = h.shape[0]
    z_dim = params["wz"].shape[1]
    n_hidden = params["qw_hid"].shape[0]

    vmem = pl.BlockSpec(memory_space=pltpu.MemorySpace.VMEM)
    smem = pl.BlockSpec(memory_space=pltpu.MemorySpace.SMEM)

    z, kl = pl.pallas_call(
        _make_prior_block_kernel(n_hidden),
        out_shape=(jax.ShapeDtypeStruct((B, z_dim), jnp.float32),
                   jax.ShapeDtypeStruct((1, 1), jnp.float32)),
        in_specs=[vmem] * 18,
        out_specs=(vmem, smem),
    )(h, eps,
      params["qw_in"], params["qb_in"], params["qw_hid"], params["qb_hid"],
      params["qw_mu"], params["qb_mu"], params["qw_lv"], params["qb_lv"],
      params["wz"], params["bz"],
      params["ow_in"], params["ob_in"], params["ow_hid"], params["ob_hid"],
      params["ow_out"], params["ob_out"])
    return z, kl[0, 0]


prior_block_forward_jit = jax.jit(prior_block_forward)


# --------------------------- parameter init ---------------------------------

def init_linear(key, in_dim, out_dim):
    kw, kb = jax.random.split(key)
    bound = 1.0 / (in_dim ** 0.5)
    w = jax.random.uniform(kw, (in_dim, out_dim), jnp.float32, -bound, bound)
    b = jax.random.uniform(kb, (1, out_dim), jnp.float32, -bound, bound)
    return w.astype(jnp.bfloat16), b                       # bf16 weights, f32 bias


def init_prior_block(key, z_dim, h_dim, hid_dim, n_layers):
    assert n_layers > 2
    n_hidden = n_layers - 2
    keys = iter(jax.random.split(key, 2 * (n_hidden + 2) + 1))

    # q_block: h_dim -> hid_dim^(n_hidden) -> 2*z_dim (residual=False)
    qw_in, qb_in = init_linear(next(keys), h_dim, hid_dim)
    qw_hid, qb_hid = [], []
    for _ in range(n_hidden):
        w, b = init_linear(next(keys), hid_dim, hid_dim)
        qw_hid.append(w)
        qb_hid.append(b)
    qw_out, qb_out = init_linear(next(keys), hid_dim, 2 * z_dim)
    # split fc_out once at init so the kernel never slices activations
    qw_mu, qw_lv = qw_out[:, :z_dim], qw_out[:, z_dim:]
    qb_mu, qb_lv = qb_out[:, :z_dim], qb_out[:, z_dim:]

    # fc_z
    wz, bz = init_linear(next(keys), z_dim, z_dim)

    # out_block: z_dim -> hid_dim^(n_hidden) -> z_dim (residual=True)
    ow_in, ob_in = init_linear(next(keys), z_dim, hid_dim)
    ow_hid, ob_hid = [], []
    for _ in range(n_hidden):
        w, b = init_linear(next(keys), hid_dim, hid_dim)
        ow_hid.append(w)
        ob_hid.append(b)
    ow_out, ob_out = init_linear(next(keys), hid_dim, z_dim)

    return dict(
        qw_in=qw_in, qb_in=qb_in,
        qw_hid=jnp.stack(qw_hid), qb_hid=jnp.stack(qb_hid),
        qw_mu=qw_mu, qb_mu=qb_mu, qw_lv=qw_lv, qb_lv=qb_lv,
        wz=wz, bz=bz,
        ow_in=ow_in, ob_in=ob_in,
        ow_hid=jnp.stack(ow_hid), ob_hid=jnp.stack(ob_hid),
        ow_out=ow_out, ob_out=ob_out,
    )


# ------------------------- pure-JAX reference --------------------------------

def _ref_block(w_in, b_in, w_hid, b_hid, w_out, b_out, x, residual):
    f32 = jnp.float32
    h = jax.nn.silu(x @ w_in.astype(f32) + b_in)
    for k in range(w_hid.shape[0]):
        h = jax.nn.silu(h @ w_hid[k].astype(f32) + b_hid[k])
    o = jax.nn.silu(h @ w_out.astype(f32) + b_out)
    return jax.nn.silu(o + x) if residual else o


def ref_forward(params, h, eps, z_dim):
    f32 = jnp.float32
    qw_out = jnp.concatenate([params["qw_mu"].astype(f32),
                              params["qw_lv"].astype(f32)], axis=1)
    qb_out = jnp.concatenate([params["qb_mu"], params["qb_lv"]], axis=1)
    q = _ref_block(params["qw_in"], params["qb_in"],
                   params["qw_hid"], params["qb_hid"],
                   qw_out, qb_out, h, residual=False)
    q_mu, q_lv = q[:, :z_dim], q[:, z_dim:]
    z_s = q_mu + jnp.exp(0.5 * q_lv) * eps
    z_in = z_s @ params["wz"].astype(f32) + params["bz"]
    z = _ref_block(params["ow_in"], params["ob_in"],
                   params["ow_hid"], params["ob_hid"],
                   params["ow_out"], params["ob_out"], z_in, residual=True)
    kl = 0.5 * (jnp.exp(q_lv) + q_mu ** 2 - 1.0 - q_lv)
    return z, jnp.sum(kl)


# --------------------------------- main --------------------------------------

if __name__ == "__main__":
    # PriorBlock(z_dim, h_dim, hid_dim, n_layers)
    z_dim, h_dim, hid_dim, n_layers = 16, 32, 64, 4
    B = 8   # TODO(synk): production should batch toward 128+ rows to fill MXU rows.

    key = jax.random.PRNGKey(0)
    kp, kh, ke = jax.random.split(key, 3)
    params = init_prior_block(kp, z_dim, h_dim, hid_dim, n_layers)

    h = jax.random.normal(kh, (B, h_dim), jnp.float32)
    eps = jax.random.normal(ke, (B, z_dim), jnp.float32)   # externalized randn

    z, kl = prior_block_forward_jit(params, h, eps)
    jax.block_until_ready(z)

    # sanity check against a pure-JAX f32 reference (loose tol: bf16 matmul path)
    r_z, r_kl = ref_forward(params, h, eps, z_dim)
    assert z.shape == (B, z_dim)
    assert jnp.allclose(z, r_z, rtol=5e-2, atol=5e-2)
    assert jnp.allclose(kl, r_kl, rtol=5e-2, atol=5e-2)

    print("KERNEL_OK")
</pallas_src>

<mosaic_0001>
module attributes {stable_mosaic.version = 11 : i64} {
  func.func @kernel(%arg0: memref<8x32xf32, #tpu.memory_space<vmem>>, %arg1: memref<8x16xf32, #tpu.memory_space<vmem>>, %arg2: memref<32x64xbf16, #tpu.memory_space<vmem>>, %arg3: memref<1x64xf32, #tpu.memory_space<vmem>>, %arg4: memref<2x64x64xbf16, #tpu.memory_space<vmem>>, %arg5: memref<2x1x64xf32, #tpu.memory_space<vmem>>, %arg6: memref<64x16xbf16, #tpu.memory_space<vmem>>, %arg7: memref<1x16xf32, #tpu.memory_space<vmem>>, %arg8: memref<64x16xbf16, #tpu.memory_space<vmem>>, %arg9: memref<1x16xf32, #tpu.memory_space<vmem>>, %arg10: memref<16x16xbf16, #tpu.memory_space<vmem>>, %arg11: memref<1x16xf32, #tpu.memory_space<vmem>>, %arg12: memref<16x64xbf16, #tpu.memory_space<vmem>>, %arg13: memref<1x64xf32, #tpu.memory_space<vmem>>, %arg14: memref<2x64x64xbf16, #tpu.memory_space<vmem>>, %arg15: memref<2x1x64xf32, #tpu.memory_space<vmem>>, %arg16: memref<64x16xbf16, #tpu.memory_space<vmem>>, %arg17: memref<1x16xf32, #tpu.memory_space<vmem>>, %arg18: memref<8x16xf32, #tpu.memory_space<vmem>>, %arg19: memref<1x1xf32, #tpu.memory_space<smem>>) attributes {dimension_semantics = [], scalar_prefetch = 0 : i64, scratch_operands = 0 : i64, tpu.core_type = #tpu.core_type<tc>} {
    %c0 = arith.constant 0 : index
    %c0_0 = arith.constant 0 : index
    %0 = vector.load %arg0[%c0, %c0_0] : memref<8x32xf32, #tpu.memory_space<vmem>>, vector<8x32xf32>
    %c0_1 = arith.constant 0 : index
    %c0_2 = arith.constant 0 : index
    %1 = vector.load %arg2[%c0_1, %c0_2] : memref<32x64xbf16, #tpu.memory_space<vmem>>, vector<32x64xbf16>
    %2 = arith.truncf %0 : vector<8x32xf32> to vector<8x32xbf16>
    %cst = arith.constant dense<0.000000e+00> : vector<8x64xf32>
    %3 = tpu.matmul %2, %1, %cst {dimension_numbers = #tpu.dot_dimension_numbers<[1], [0], [0], [1], [0, 0, 1, 1], [], []>} : vector<8x32xbf16>, vector<32x64xbf16>, vector<8x64xf32> -> vector<8x64xf32>
    %c0_3 = arith.constant 0 : index
    %c0_4 = arith.constant 0 : index
    %4 = vector.load %arg3[%c0_3, %c0_4] : memref<1x64xf32, #tpu.memory_space<vmem>>, vector<1x64xf32>
    %5 = vector.broadcast %4 : vector<1x64xf32> to vector<8x64xf32>
    %6 = arith.addf %3, %5 : vector<8x64xf32>
    %7 = arith.negf %6 : vector<8x64xf32>
    %8 = math.exp %7 : vector<8x64xf32>
    %cst_5 = arith.constant 1.000000e+00 : f32
    %9 = vector.broadcast %cst_5 : f32 to vector<8x64xf32>
    %10 = arith.addf %9, %8 : vector<8x64xf32>
    %11 = arith.divf %9, %10 : vector<8x64xf32>
    %12 = arith.mulf %6, %11 : vector<8x64xf32>
    %c0_6 = arith.constant 0 : index
    %c0_7 = arith.constant 0 : index
    %c0_8 = arith.constant 0 : index
    %13 = vector.load %arg4[%c0_6, %c0_7, %c0_8] : memref<2x64x64xbf16, #tpu.memory_space<vmem>>, vector<1x64x64xbf16>
    %14 = vector.shape_cast %13 : vector<1x64x64xbf16> to vector<64x64xbf16>
    %15 = arith.truncf %12 : vector<8x64xf32> to vector<8x64xbf16>
    %cst_9 = arith.constant dense<0.000000e+00> : vector<8x64xf32>
    %16 = tpu.matmul %15, %14, %cst_9 {dimension_numbers = #tpu.dot_dimension_numbers<[1], [0], [0], [1], [0, 0, 1, 1], [], []>} : vector<8x64xbf16>, vector<64x64xbf16>, vector<8x64xf32> -> vector<8x64xf32>
    %c0_10 = arith.constant 0 : index
    %c0_11 = arith.constant 0 : index
    %c0_12 = arith.constant 0 : index
    %17 = vector.load %arg5[%c0_10, %c0_11, %c0_12] : memref<2x1x64xf32, #tpu.memory_space<vmem>>, vector<1x1x64xf32>
    %18 = vector.shape_cast %17 : vector<1x1x64xf32> to vector<1x64xf32>
    %19 = vector.broadcast %18 : vector<1x64xf32> to vector<8x64xf32>
    %20 = arith.addf %16, %19 : vector<8x64xf32>
    %21 = arith.negf %20 : vector<8x64xf32>
    %22 = math.exp %21 : vector<8x64xf32>
    %cst_13 = arith.constant 1.000000e+00 : f32
    %23 = vector.broadcast %cst_13 : f32 to vector<8x64xf32>
    %24 = arith.addf %23, %22 : vector<8x64xf32>
    %25 = arith.divf %23, %24 : vector<8x64xf32>
    %26 = arith.mulf %20, %25 : vector<8x64xf32>
    %c1 = arith.constant 1 : index
    %c0_14 = arith.constant 0 : index
    %c0_15 = arith.constant 0 : index
    %27 = vector.load %arg4[%c1, %c0_14, %c0_15] : memref<2x64x64xbf16, #tpu.memory_space<vmem>>, vector<1x64x64xbf16>
    %28 = vector.shape_cast %27 : vector<1x64x64xbf16> to vector<64x64xbf16>
    %29 = arith.truncf %26 : vector<8x64xf32> to vector<8x64xbf16>
    %cst_16 = arith.constant dense<0.000000e+00> : vector<8x64xf32>
    %30 = tpu.matmul %29, %28, %cst_16 {dimension_numbers = #tpu.dot_dimension_numbers<[1], [0], [0], [1], [0, 0, 1, 1], [], []>} : vector<8x64xbf16>, vector<64x64xbf16>, vector<8x64xf32> -> vector<8x64xf32>
    %c1_17 = arith.constant 1 : index
    %c0_18 = arith.constant 0 : index
    %c0_19 = arith.constant 0 : index
    %31 = vector.load %arg5[%c1_17, %c0_18, %c0_19] : memref<2x1x64xf32, #tpu.memory_space<vmem>>, vector<1x1x64xf32>
    %32 = vector.shape_cast %31 : vector<1x1x64xf32> to vector<1x64xf32>
    %33 = vector.broadcast %32 : vector<1x64xf32> to vector<8x64xf32>
    %34 = arith.addf %30, %33 : vector<8x64xf32>
    %35 = arith.negf %34 : vector<8x64xf32>
    %36 = math.exp %35 : vector<8x64xf32>
    %cst_20 = arith.constant 1.000000e+00 : f32
    %37 = vector.broadcast %cst_20 : f32 to vector<8x64xf32>
    %38 = arith.addf %37, %36 : vector<8x64xf32>
    %39 = arith.divf %37, %38 : vector<8x64xf32>
    %40 = arith.mulf %34, %39 : vector<8x64xf32>
    %c0_21 = arith.constant 0 : index
    %c0_22 = arith.constant 0 : index
    %41 = vector.load %arg6[%c0_21, %c0_22] : memref<64x16xbf16, #tpu.memory_space<vmem>>, vector<64x16xbf16>
    %42 = arith.truncf %40 : vector<8x64xf32> to vector<8x64xbf16>
    %cst_23 = arith.constant dense<0.000000e+00> : vector<8x16xf32>
    %43 = tpu.matmul %42, %41, %cst_23 {dimension_numbers = #tpu.dot_dimension_numbers<[1], [0], [0], [1], [0, 0, 1, 1], [], []>} : vector<8x64xbf16>, vector<64x16xbf16>, vector<8x16xf32> -> vector<8x16xf32>
    %c0_24 = arith.constant 0 : index
    %c0_25 = arith.constant 0 : index
    %44 = vector.load %arg7[%c0_24, %c0_25] : memref<1x16xf32, #tpu.memory_space<vmem>>, vector<1x16xf32>
    %45 = vector.broadcast %44 : vector<1x16xf32> to vector<8x16xf32>
    %46 = arith.addf %43, %45 : vector<8x16xf32>
    %47 = arith.negf %46 : vector<8x16xf32>
    %48 = math.exp %47 : vector<8x16xf32>
    %cst_26 = arith.constant 1.000000e+00 : f32
    %49 = vector.broadcast %cst_26 : f32 to vector<8x16xf32>
    %50 = arith.addf %49, %48 : vector<8x16xf32>
    %51 = arith.divf %49, %50 : vector<8x16xf32>
    %52 = arith.mulf %46, %51 : vector<8x16xf32>
    %c0_27 = arith.constant 0 : index
    %c0_28 = arith.constant 0 : index
    %53 = vector.load %arg8[%c0_27, %c0_28] : memref<64x16xbf16, #tpu.memory_space<vmem>>, vector<64x16xbf16>
    %54 = arith.truncf %40 : vector<8x64xf32> to vector<8x64xbf16>
    %cst_29 = arith.constant dense<0.000000e+00> : vector<8x16xf32>
    %55 = tpu.matmul %54, %53, %cst_29 {dimension_numbers = #tpu.dot_dimension_numbers<[1], [0], [0], [1], [0, 0, 1, 1], [], []>} : vector<8x64xbf16>, vector<64x16xbf16>, vector<8x16xf32> -> vector<8x16xf32>
    %c0_30 = arith.constant 0 : index
    %c0_31 = arith.constant 0 : index
    %56 = vector.load %arg9[%c0_30, %c0_31] : memref<1x16xf32, #tpu.memory_space<vmem>>, vector<1x16xf32>
    %57 = vector.broadcast %56 : vector<1x16xf32> to vector<8x16xf32>
    %58 = arith.addf %55, %57 : vector<8x16xf32>
    %59 = arith.negf %58 : vector<8x16xf32>
    %60 = math.exp %59 : vector<8x16xf32>
    %cst_32 = arith.constant 1.000000e+00 : f32
    %61 = vector.broadcast %cst_32 : f32 to vector<8x16xf32>
    %62 = arith.addf %61, %60 : vector<8x16xf32>
    %63 = arith.divf %61, %62 : vector<8x16xf32>
    %64 = arith.mulf %58, %63 : vector<8x16xf32>
    %cst_33 = arith.constant 5.000000e-01 : f32
    %65 = vector.broadcast %cst_33 : f32 to vector<8x16xf32>
    %66 = arith.mulf %65, %64 : vector<8x16xf32>
    %67 = math.exp %66 : vector<8x16xf32>
    %c0_34 = arith.constant 0 : index
    %c0_35 = arith.constant 0 : index
    %68 = vector.load %arg1[%c0_34, %c0_35] : memref<8x16xf32, #tpu.memory_space<vmem>>, vector<8x16xf32>
    %69 = arith.mulf %67, %68 : vector<8x16xf32>
    %70 = arith.addf %52, %69 : vector<8x16xf32>
    %c0_36 = arith.constant 0 : index
    %c0_37 = arith.constant 0 : index
    %71 = vector.load %arg10[%c0_36, %c0_37] : memref<16x16xbf16, #tpu.memory_space<vmem>>, vector<16x16xbf16>
    %72 = arith.truncf %70 : vector<8x16xf32> to vector<8x16xbf16>
    %cst_38 = arith.constant dense<0.000000e+00> : vector<8x16xf32>
    %73 = tpu.matmul %72, %71, %cst_38 {dimension_numbers = #tpu.dot_dimension_numbers<[1], [0], [0], [1], [0, 0, 1, 1], [], []>} : vector<8x16xbf16>, vector<16x16xbf16>, vector<8x16xf32> -> vector<8x16xf32>
    %c0_39 = arith.constant 0 : index
    %c0_40 = arith.constant 0 : index
    %74 = vector.load %arg11[%c0_39, %c0_40] : memref<1x16xf32, #tpu.memory_space<vmem>>, vector<1x16xf32>
    %75 = vector.broadcast %74 : vector<1x16xf32> to vector<8x16xf32>
    %76 = arith.addf %73, %75 : vector<8x16xf32>
    %c0_41 = arith.constant 0 : index
    %c0_42 = arith.constant 0 : index
    %77 = vector.load %arg12[%c0_41, %c0_42] : memref<16x64xbf16, #tpu.memory_space<vmem>>, vector<16x64xbf16>
    %78 = arith.truncf %76 : vector<8x16xf32> to vector<8x16xbf16>
    %cst_43 = arith.constant dense<0.000000e+00> : vector<8x64xf32>
    %79 = tpu.matmul %78, %77, %cst_43 {dimension_numbers = #tpu.dot_dimension_numbers<[1], [0], [0], [1], [0, 0, 1, 1], [], []>} : vector<8x16xbf16>, vector<16x64xbf16>, vector<8x64xf32> -> vector<8x64xf32>
    %c0_44 = arith.constant 0 : index
    %c0_45 = arith.constant 0 : index
    %80 = vector.load %arg13[%c0_44, %c0_45] : memref<1x64xf32, #tpu.memory_space<vmem>>, vector<1x64xf32>
    %81 = vector.broadcast %80 : vector<1x64xf32> to vector<8x64xf32>
    %82 = arith.addf %79, %81 : vector<8x64xf32>
    %83 = arith.negf %82 : vector<8x64xf32>
    %84 = math.exp %83 : vector<8x64xf32>
    %cst_46 = arith.constant 1.000000e+00 : f32
    %85 = vector.broadcast %cst_46 : f32 to vector<8x64xf32>
    %86 = arith.addf %85, %84 : vector<8x64xf32>
    %87 = arith.divf %85, %86 : vector<8x64xf32>
    %88 = arith.mulf %82, %87 : vector<8x64xf32>
    %c0_47 = arith.constant 0 : index
    %c0_48 = arith.constant 0 : index
    %c0_49 = arith.constant 0 : index
    %89 = vector.load %arg14[%c0_47, %c0_48, %c0_49] : memref<2x64x64xbf16, #tpu.memory_space<vmem>>, vector<1x64x64xbf16>
    %90 = vector.shape_cast %89 : vector<1x64x64xbf16> to vector<64x64xbf16>
    %91 = arith.truncf %88 : vector<8x64xf32> to vector<8x64xbf16>
    %cst_50 = arith.constant dense<0.000000e+00> : vector<8x64xf32>
    %92 = tpu.matmul %91, %90, %cst_50 {dimension_numbers = #tpu.dot_dimension_numbers<[1], [0], [0], [1], [0, 0, 1, 1], [], []>} : vector<8x64xbf16>, vector<64x64xbf16>, vector<8x64xf32> -> vector<8x64xf32>
    %c0_51 = arith.constant 0 : index
    %c0_52 = arith.constant 0 : index
    %c0_53 = arith.constant 0 : index
    %93 = vector.load %arg15[%c0_51, %c0_52, %c0_53] : memref<2x1x64xf32, #tpu.memory_space<vmem>>, vector<1x1x64xf32>
    %94 = vector.shape_cast %93 : vector<1x1x64xf32> to vector<1x64xf32>
    %95 = vector.broadcast %94 : vector<1x64xf32> to vector<8x64xf32>
    %96 = arith.addf %92, %95 : vector<8x64xf32>
    %97 = arith.negf %96 : vector<8x64xf32>
    %98 = math.exp %97 : vector<8x64xf32>
    %cst_54 = arith.constant 1.000000e+00 : f32
    %99 = vector.broadcast %cst_54 : f32 to vector<8x64xf32>
    %100 = arith.addf %99, %98 : vector<8x64xf32>
    %101 = arith.divf %99, %100 : vector<8x64xf32>
    %102 = arith.mulf %96, %101 : vector<8x64xf32>
    %c1_55 = arith.constant 1 : index
    %c0_56 = arith.constant 0 : index
    %c0_57 = arith.constant 0 : index
    %103 = vector.load %arg14[%c1_55, %c0_56, %c0_57] : memref<2x64x64xbf16, #tpu.memory_space<vmem>>, vector<1x64x64xbf16>
    %104 = vector.shape_cast %103 : vector<1x64x64xbf16> to vector<64x64xbf16>
    %105 = arith.truncf %102 : vector<8x64xf32> to vector<8x64xbf16>
    %cst_58 = arith.constant dense<0.000000e+00> : vector<8x64xf32>
    %106 = tpu.matmul %105, %104, %cst_58 {dimension_numbers = #tpu.dot_dimension_numbers<[1], [0], [0], [1], [0, 0, 1, 1], [], []>} : vector<8x64xbf16>, vector<64x64xbf16>, vector<8x64xf32> -> vector<8x64xf32>
    %c1_59 = arith.constant 1 : index
    %c0_60 = arith.constant 0 : index
    %c0_61 = arith.constant 0 : index
    %107 = vector.load %arg15[%c1_59, %c0_60, %c0_61] : memref<2x1x64xf32, #tpu.memory_space<vmem>>, vector<1x1x64xf32>
    %108 = vector.shape_cast %107 : vector<1x1x64xf32> to vector<1x64xf32>
    %109 = vector.broadcast %108 : vector<1x64xf32> to vector<8x64xf32>
    %110 = arith.addf %106, %109 : vector<8x64xf32>
    %111 = arith.negf %110 : vector<8x64xf32>
    %112 = math.exp %111 : vector<8x64xf32>
    %cst_62 = arith.constant 1.000000e+00 : f32
    %113 = vector.broadcast %cst_62 : f32 to vector<8x64xf32>
    %114 = arith.addf %113, %112 : vector<8x64xf32>
    %115 = arith.divf %113, %114 : vector<8x64xf32>
    %116 = arith.mulf %110, %115 : vector<8x64xf32>
    %c0_63 = arith.constant 0 : index
    %c0_64 = arith.constant 0 : index
    %117 = vector.load %arg16[%c0_63, %c0_64] : memref<64x16xbf16, #tpu.memory_space<vmem>>, vector<64x16xbf16>
    %118 = arith.truncf %116 : vector<8x64xf32> to vector<8x64xbf16>
    %cst_65 = arith.constant dense<0.000000e+00> : vector<8x16xf32>
    %119 = tpu.matmul %118, %117, %cst_65 {dimension_numbers = #tpu.dot_dimension_numbers<[1], [0], [0], [1], [0, 0, 1, 1], [], []>} : vector<8x64xbf16>, vector<64x16xbf16>, vector<8x16xf32> -> vector<8x16xf32>
    %c0_66 = arith.constant 0 : index
    %c0_67 = arith.constant 0 : index
    %120 = vector.load %arg17[%c0_66, %c0_67] : memref<1x16xf32, #tpu.memory_space<vmem>>, vector<1x16xf32>
    %121 = vector.broadcast %120 : vector<1x16xf32> to vector<8x16xf32>
    %122 = arith.addf %119, %121 : vector<8x16xf32>
    %123 = arith.negf %122 : vector<8x16xf32>
    %124 = math.exp %123 : vector<8x16xf32>
    %cst_68 = arith.constant 1.000000e+00 : f32
    %125 = vector.broadcast %cst_68 : f32 to vector<8x16xf32>
    %126 = arith.addf %125, %124 : vector<8x16xf32>
    %127 = arith.divf %125, %126 : vector<8x16xf32>
    %128 = arith.mulf %122, %127 : vector<8x16xf32>
    %129 = arith.addf %128, %76 : vector<8x16xf32>
    %130 = arith.negf %129 : vector<8x16xf32>
    %131 = math.exp %130 : vector<8x16xf32>
    %cst_69 = arith.constant 1.000000e+00 : f32
    %132 = vector.broadcast %cst_69 : f32 to vector<8x16xf32>
    %133 = arith.addf %132, %131 : vector<8x16xf32>
    %134 = arith.divf %132, %133 : vector<8x16xf32>
    %135 = arith.mulf %129, %134 : vector<8x16xf32>
    %c0_70 = arith.constant 0 : index
    %c0_71 = arith.constant 0 : index
    %136 = vector.load %arg18[%c0_70, %c0_71] : memref<8x16xf32, #tpu.memory_space<vmem>>, vector<8x16xf32>
    tpu.vector_store %arg18[%c0_70, %c0_71], %135 {strides = array<i32>} : memref<8x16xf32, #tpu.memory_space<vmem>>, vector<8x16xf32>,
    %137 = math.exp %64 : vector<8x16xf32>
    %138 = arith.mulf %52, %52 : vector<8x16xf32>
    %139 = arith.addf %137, %138 : vector<8x16xf32>
    %cst_72 = arith.constant 1.000000e+00 : f32
    %140 = vector.broadcast %cst_72 : f32 to vector<8x16xf32>
    %141 = arith.subf %139, %140 : vector<8x16xf32>
    %142 = arith.subf %141, %64 : vector<8x16xf32>
    %cst_73 = arith.constant 5.000000e-01 : f32
    %143 = vector.broadcast %cst_73 : f32 to vector<8x16xf32>
    %144 = arith.mulf %143, %142 : vector<8x16xf32>
    %145 = vector.shape_cast %144 : vector<8x16xf32> to vector<1x8x16xf32>
    %cst_74 = arith.constant dense<0.000000e+00> : vector<1xf32>
    %146 = vector.multi_reduction <add>, %145, %cst_74 [1, 2] : vector<1x8x16xf32> to vector<1xf32>
    %147 = vector.shape_cast %146 : vector<1xf32> to vector<1x1x1xf32>
    %148 = vector.extract %147[0, 0, 0] : f32 from vector<1x1x1xf32>
    %c0_75 = arith.constant 0 : index
    %c0_76 = arith.constant 0 : index
    %149 = memref.load %arg19[%c0_75, %c0_76] : memref<1x1xf32, #tpu.memory_space<smem>>
    memref.store %148, %arg19[%c0_75, %c0_76] : memref<1x1xf32, #tpu.memory_space<smem>>
    return
  }
}

</mosaic_0001>

<bundles_post_ra>
// kernel: prior_block_forward.1
= control target key start
LH: loop header
LB: loop body
LE: loop exit
PB: predicated region body
PF: predicated region fallthrough
CT: control target
= control target key end

     0   :  { %s2109_s0 = inlined_call_operand.vmem [shape: f32[8,32], index: 0, kind: input, shape index: {}]   ;;  %s2110_s1 = inlined_call_operand.vmem [shape: f32[8,16], index: 1, kind: input, shape index: {}]   ;;  %s2111_s2 = inlined_call_operand.vmem [shape: bf16[32,64], index: 2, kind: input, shape index: {}]   ;;  %s2112_s3 = inlined_call_operand.hbm [shape: f32[1,64], index: 3, kind: input, shape index: {}]   ;;  %s2113_s4 = inlined_call_operand.vmem [shape: bf16[2,64,64], index: 4, kind: input, shape index: {}]   ;;  %s2114_s5 = inlined_call_operand.hbm [shape: f32[2,1,64], index: 5, kind: input, shape index: {}]   ;;  %s2115_s6 = inlined_call_operand.vmem [shape: bf16[64,16], index: 6, kind: input, shape index: {}]   ;;  %s2116_s7 = inlined_call_operand.hbm [shape: f32[1,16], index: 7, kind: input, shape index: {}]   ;;  %s2117_s8 = inlined_call_operand.vmem [shape: bf16[64,16], index: 8, kind: input, shape index: {}]   ;;  %s2118_s9 = inlined_call_operand.hbm [shape: f32[1,16], index: 9, kind: input, shape index: {}]   ;;  %s2119_s10 = inlined_call_operand.hbm [shape: bf16[16,16], index: 10, kind: input, shape index: {}]   ;;  %s2120_s11 = inlined_call_operand.hbm [shape: f32[1,16], index: 11, kind: input, shape index: {}]   ;;  %s2121_s12 = inlined_call_operand.hbm [shape: bf16[16,64], index: 12, kind: input, shape index: {}]   ;;  %s2122_s13 = inlined_call_operand.hbm [shape: f32[1,64], index: 13, kind: input, shape index: {}]   ;;  %s2123_s14 = inlined_call_operand.vmem [shape: bf16[2,64,64], index: 14, kind: input, shape index: {}]   ;;  %s2124_s15 = inlined_call_operand.hbm [shape: f32[2,1,64], index: 15, kind: input, shape index: {}]   ;;  %s2125_s16 = inlined_call_operand.vmem [shape: bf16[64,16], index: 16, kind: input, shape index: {}]   ;;  %s2126_s17 = inlined_call_operand.hbm [shape: f32[1,16], index: 17, kind: input, shape index: {}]   ;;  %s2127_s18 = inlined_call_operand.hbm [shape: f32[8,16], index: 18, kind: output, shape index: {0}]   ;;  %s2128_s19 = inlined_call_operand.hbm [shape: f32[1,1], index: 19, kind: output, shape index: {1}]  }
   0x1   :  { %2132 = sst [smem:[#allocation30_spill]] %s2109_s0 }
   0x2   :  { %2133 = sst [smem:[#allocation31_spill]] %s2110_s1 }
   0x3   :  { %2134 = sst [smem:[#allocation32_spill]] %s2111_s2 }
   0x4   :  { %2135 = sst [smem:[#allocation33_spill]] %s2112_s3 }
   0x5   :  { %2136 = sst [smem:[#allocation34_spill]] %s2127_s18 }
   0x6   :  { %25 = vsyncpa [#allocation3], 0 }
   0x7   :  { %26 = vsyncpa [#allocation7], 0 }
   0x8   :  { %27 = vsyncpa [#allocation10], 0 }
   0x9   :  { %28 = vsyncpa [#allocation13], 0 }
   0xa   :  { %29 = vsyncpa [#allocation16], 0 }
   0xb   :  { %30 = vsyncpa [#allocation19], 0 }
   0xc   :  { %31 = vsyncpa [#allocation4], 0 }
   0xd   :  { %32 = vsyncpa [#allocation5], 0  ;;  %s1677_s0 = smov [#allocation6]   ;;  %s1409_s1 = scalar_lea.hbm %s2114_s5, 32 }
   0xe   :  { %s56_s30 = sshll.u32 %s1677_s0, 4  ;;  %p1410_p0 = scmp.ne.s32.totalorder %s2114_s5, %s1409_s1  ;;  %s57_s30 = int_to_ptr.vmem [resolvable:$true] %s56_s30 }
   0xf   :  { %p1413_p1 = scmp.lt.u32.totalorder %s1409_s1, %s2114_s5 }
  0x11   :  { %p1415_p2 = pnand %p1413_p1, %p1410_p0 }
  0x13   :  { %1418 = shalt.err (!%p1415_p2)
}
  0x14   :  { %s1419_s25 = scalar_lea.vmem %s57_s30, 32  ;;  %p1424_p4 = scmp.lt.s32.totalorder %s57_s30, %s57_s30 }
  0x15   :  { %p1420_p3 = scmp.ne.s32.totalorder %s57_s30, %s1419_s25  ;;  %p1425_p5 = scmp.lt.s32.totalorder %s1419_s25, %s1419_s25 }
  0x17   :  { %p1426_p6 = por %p1425_p5, %p1424_p4 }
  0x19   :  { %p1427_p7 = pnand %p1426_p6, %p1420_p3 }
  0x1b   :  { %1430 = shalt.err (!%p1427_p7)
}
  0x1c   :  { %s1678_s3 = smov 16   ;;  %s1679_s26 = smov 1  }
  0x1d   :  { %62 = dma.hbm_to_vmem [thread:$0]  %s2114_s5, 32, %s57_s30, [#allocation7], %s1678_s3, %s1678_s3, %s1679_s26  }
  0x1e   :  { %s1680_s29 = smov [#allocation9]   ;;  %s1681_s20 = smov [#allocation12]  }
  0x1f   :  { %s83_s0 = sshll.u32 %s1680_s29, 4  ;;  %s105_s21 = sshll.u32 %s1681_s20, 4  ;;  %s84_s0 = int_to_ptr.vmem [resolvable:$true] %s83_s0  ;;  %s106_s21 = int_to_ptr.vmem [resolvable:$true] %s105_s21 }
  0x20   :  { %s1431_s2 = scalar_lea.hbm %s2118_s9, 16 }
  0x21   :  { %p1432_p8 = scmp.ne.s32.totalorder %s2118_s9, %s1431_s2  ;;  %p1435_p9 = scmp.lt.u32.totalorder %s1431_s2, %s2118_s9 }
  0x23   :  { %p1437_p10 = pnand %p1435_p9, %p1432_p8 }
  0x25   :  { %1440 = shalt.err (!%p1437_p10)
}
  0x26   :  { %s1441_s5 = scalar_lea.vmem %s84_s0, 16  ;;  %s1445_s30 = scalar_lea.vmem %s84_s0, 32 }
  0x27   :  { %p1442_p11 = scmp.ne.s32.totalorder %s84_s0, %s1441_s5  ;;  %p1446_p12 = scmp.lt.s32.totalorder %s84_s0, %s84_s0 }
  0x28   :  { %p1447_p13 = scmp.lt.s32.totalorder %s1445_s30, %s1441_s5 }
  0x2a   :  { %p1448_p0 = por %p1447_p13, %p1446_p12 }
  0x2c   :  { %p1449_p1 = pnand %p1448_p0, %p1442_p11 }
  0x2e   :  { %1452 = shalt.err (!%p1449_p1)
}
  0x2f   :  { %86 = dma.hbm_to_vmem [thread:$0]  %s2118_s9, 16, %s84_s0, [#allocation10]  }
  0x30   :  { %s1453_s18 = scalar_lea.hbm %s2120_s11, 16 }
  0x31   :  { %p1454_p2 = scmp.ne.s32.totalorder %s2120_s11, %s1453_s18  ;;  %p1457_p3 = scmp.lt.u32.totalorder %s1453_s18, %s2120_s11 }
  0x33   :  { %p1459_p4 = pnand %p1457_p3, %p1454_p2 }
  0x35   :  { %1462 = shalt.err (!%p1459_p4)
}
  0x36   :  { %s1463_s24 = scalar_lea.vmem %s106_s21, 16  ;;  %s1467_s25 = scalar_lea.vmem %s106_s21, 32 }
  0x37   :  { %p1464_p5 = scmp.ne.s32.totalorder %s106_s21, %s1463_s24  ;;  %p1468_p6 = scmp.lt.s32.totalorder %s106_s21, %s106_s21 }
  0x38   :  { %p1469_p7 = scmp.lt.s32.totalorder %s1467_s25, %s1463_s24 }
  0x3a   :  { %p1470_p8 = por %p1469_p7, %p1468_p6 }
  0x3c   :  { %p1471_p9 = pnand %p1470_p8, %p1464_p5 }
  0x3e   :  { %1474 = shalt.err (!%p1471_p9)
}
  0x3f   :  { %108 = dma.hbm_to_vmem [thread:$0]  %s2120_s11, 16, %s106_s21, [#allocation13]  }
  0x40   :  { %s1682_s5 = smov [#allocation15]   ;;  %s1683_s27 = smov [#allocation2]  }
  0x41   :  { %s127_s30 = sshll.u32 %s1682_s5, 4  ;;  %s45_s28 = sshll.u32 %s1683_s27, 4  ;;  %s128_s30 = int_to_ptr.vmem [resolvable:$true] %s127_s30  ;;  %s46_s28 = int_to_ptr.vmem [resolvable:$true] %s45_s28 }
  0x42   :  { %s1475_s18 = scalar_lea.hbm %s2122_s13, 16 }
  0x43   :  { %p1476_p10 = scmp.ne.s32.totalorder %s2122_s13, %s1475_s18  ;;  %p1479_p11 = scmp.lt.u32.totalorder %s1475_s18, %s2122_s13 }
  0x45   :  { %p1481_p12 = pnand %p1479_p11, %p1476_p10 }
  0x47   :  { %1484 = shalt.err (!%p1481_p12)
}
  0x48   :  { %s1485_s11 = scalar_lea.vmem %s128_s30, 16  ;;  %s1489_s21 = scalar_lea.vmem %s128_s30, 32 }
  0x49   :  { %p1486_p13 = scmp.ne.s32.totalorder %s128_s30, %s1485_s11  ;;  %p1490_p0 = scmp.lt.s32.totalorder %s128_s30, %s128_s30 }
  0x4a   :  { %p1491_p1 = scmp.lt.s32.totalorder %s1489_s21, %s1485_s11 }
  0x4c   :  { %p1492_p2 = por %p1491_p1, %p1490_p0 }
  0x4e   :  { %p1493_p3 = pnand %p1492_p2, %p1486_p13 }
  0x50   :  { %1496 = shalt.err (!%p1493_p3)
}
  0x51   :  { %130 = dma.hbm_to_vmem [thread:$0]  %s2122_s13, 16, %s128_s30, [#allocation16]  }
  0x52   :  { %s2137_s5 = sld [smem:[#allocation33_spill]] }
  0x58   :  { %s1497_s27 = scalar_lea.hbm %s2137_s5, 16 }
  0x59   :  { %p1498_p4 = scmp.ne.s32.totalorder %s2137_s5, %s1497_s27  ;;  %p1501_p5 = scmp.lt.u32.totalorder %s1497_s27, %s2137_s5 }
  0x5b   :  { %p1503_p6 = pnand %p1501_p5, %p1498_p4 }
  0x5d   :  { %1506 = shalt.err (!%p1503_p6)
}
  0x5e   :  { %s1507_s22 = scalar_lea.vmem %s46_s28, 16  ;;  %s1511_s2 = scalar_lea.vmem %s46_s28, 32 }
  0x5f   :  { %p1508_p7 = scmp.ne.s32.totalorder %s46_s28, %s1507_s22  ;;  %p1512_p8 = scmp.lt.s32.totalorder %s46_s28, %s46_s28 }
  0x60   :  { %p1513_p9 = scmp.lt.s32.totalorder %s1511_s2, %s1507_s22 }
  0x62   :  { %p1514_p10 = por %p1513_p9, %p1512_p8 }
  0x64   :  { %p1515_p11 = pnand %p1514_p10, %p1508_p7 }
  0x66   :  { %1518 = shalt.err (!%p1515_p11)
}
  0x67   :  { %48 = dma.hbm_to_vmem [thread:$0]  %s2137_s5, 16, %s46_s28, [#allocation3]  }
  0x68   :  { %s1684_s23 = smov [#allocation8]   ;;  %s1685_s21 = smov [#allocation11]  }
  0x69   :  { %s71_s11 = sshll.u32 %s1684_s23, 4  ;;  %s92_s24 = sshll.u32 %s1685_s21, 4  ;;  %s72_s11 = int_to_ptr.vmem [resolvable:$true] %s71_s11  ;;  %s93_s24 = int_to_ptr.vmem [resolvable:$true] %s92_s24 }
  0x6a   :  { %s1519_s0 = scalar_lea.hbm %s2116_s7, 16 }
  0x6b   :  { %p1520_p12 = scmp.ne.s32.totalorder %s2116_s7, %s1519_s0  ;;  %p1523_p13 = scmp.lt.u32.totalorder %s1519_s0, %s2116_s7 }
  0x6d   :  { %p1525_p0 = pnand %p1523_p13, %p1520_p12 }
  0x6f   :  { %1528 = shalt.err (!%p1525_p0)
}
  0x70   :  { %s1529_s28 = scalar_lea.vmem %s72_s11, 16  ;;  %s1533_s5 = scalar_lea.vmem %s72_s11, 32 }
  0x71   :  { %p1530_p1 = scmp.ne.s32.totalorder %s72_s11, %s1529_s28  ;;  %p1534_p2 = scmp.lt.s32.totalorder %s72_s11, %s72_s11 }
  0x72   :  { %p1535_p3 = scmp.lt.s32.totalorder %s1533_s5, %s1529_s28 }
  0x74   :  { %p1536_p4 = por %p1535_p3, %p1534_p2 }
  0x76   :  { %p1537_p5 = pnand %p1536_p4, %p1530_p1 }
  0x78   :  { %1540 = shalt.err (!%p1537_p5)
}
  0x79   :  { %74 = dma.hbm_to_vmem [thread:$0]  %s2116_s7, 16, %s72_s11, [#allocation7]  }
  0x7a   :  { %s1541_s30 = scalar_lea.hbm %s2119_s10, 128 }
  0x7b   :  { %p1542_p6 = scmp.ne.s32.totalorder %s2119_s10, %s1541_s30  ;;  %p1545_p7 = scmp.lt.u32.totalorder %s1541_s30, %s2119_s10 }
  0x7d   :  { %p1547_p8 = pnand %p1545_p7, %p1542_p6 }
  0x7f   :  { %1550 = shalt.err (!%p1547_p8)
}
  0x80   :  { %s1551_s0 = scalar_lea.vmem %s93_s24, 128  ;;  %p1556_p10 = scmp.lt.s32.totalorder %s93_s24, %s93_s24 }
  0x81   :  { %p1552_p9 = scmp.ne.s32.totalorder %s93_s24, %s1551_s0  ;;  %p1557_p11 = scmp.lt.s32.totalorder %s1551_s0, %s1551_s0 }
  0x83   :  { %p1558_p12 = por %p1557_p11, %p1556_p10 }
  0x85   :  { %p1559_p13 = pnand %p1558_p12, %p1552_p9 }
  0x87   :  { %1562 = shalt.err (!%p1559_p13)
}
  0x88   :  { %s1686_s7 = smov 64   ;;  %s1687_s11 = smov 4  }
  0x89   :  { %98 = dma.hbm_to_vmem [thread:$0]  %s2119_s10, 128, %s93_s24, [#allocation10], %s1686_s7, %s1686_s7, %s1687_s11  }
  0x8a   :  { %s1688_s20 = smov [#allocation14]   ;;  %s1689_s28 = smov [#allocation17]  }
  0x8b   :  { %s114_s18 = sshll.u32 %s1688_s20, 4  ;;  %s138_s5 = sshll.u32 %s1689_s28, 4  ;;  %s115_s18 = int_to_ptr.vmem [resolvable:$true] %s114_s18  ;;  %s139_s5 = int_to_ptr.vmem [resolvable:$true] %s138_s5 }
  0x8c   :  { %s1563_s2 = scalar_lea.hbm %s2121_s12, 128 }
  0x8d   :  { %p1564_p0 = scmp.ne.s32.totalorder %s2121_s12, %s1563_s2  ;;  %p1567_p1 = scmp.lt.u32.totalorder %s1563_s2, %s2121_s12 }
  0x8f   :  { %p1569_p2 = pnand %p1567_p1, %p1564_p0 }
  0x91   :  { %1572 = shalt.err (!%p1569_p2)
}
  0x92   :  { %s1573_s10 = scalar_lea.vmem %s115_s18, 128  ;;  %p1578_p4 = scmp.lt.s32.totalorder %s115_s18, %s115_s18 }
  0x93   :  { %p1574_p3 = scmp.ne.s32.totalorder %s115_s18, %s1573_s10  ;;  %p1579_p5 = scmp.lt.s32.totalorder %s1573_s10, %s1573_s10 }
  0x95   :  { %p1580_p6 = por %p1579_p5, %p1578_p4 }
  0x97   :  { %p1581_p7 = pnand %p1580_p6, %p1574_p3 }
  0x99   :  { %1584 = shalt.err (!%p1581_p7)
}
  0x9a   :  { %120 = dma.hbm_to_vmem [thread:$0]  %s2121_s12, 128, %s115_s18, [#allocation13], %s1686_s7, %s1686_s7, %s1687_s11  }
  0x9b   :  { %s1585_s27 = scalar_lea.hbm %s2124_s15, 32 }
  0x9c   :  { %p1586_p8 = scmp.ne.s32.totalorder %s2124_s15, %s1585_s27  ;;  %p1589_p9 = scmp.lt.u32.totalorder %s1585_s27, %s2124_s15 }
  0x9e   :  { %p1591_p10 = pnand %p1589_p9, %p1586_p8 }
  0xa0   :  { %1594 = shalt.err (!%p1591_p10)
}
  0xa1   :  { %s1595_s22 = scalar_lea.vmem %s139_s5, 32  ;;  %p1600_p12 = scmp.lt.s32.totalorder %s139_s5, %s139_s5 }
  0xa2   :  { %p1596_p11 = scmp.ne.s32.totalorder %s139_s5, %s1595_s22  ;;  %p1601_p13 = scmp.lt.s32.totalorder %s1595_s22, %s1595_s22 }
  0xa4   :  { %p1602_p0 = por %p1601_p13, %p1600_p12 }
  0xa6   :  { %p1603_p1 = pnand %p1602_p0, %p1596_p11 }
  0xa8   :  { %1606 = shalt.err (!%p1603_p1)
}
  0xa9   :  { %144 = dma.hbm_to_vmem [thread:$0]  %s2124_s15, 32, %s139_s5, [#allocation16], %s1678_s3, %s1678_s3, %s1679_s26  }
  0xaa   :  { %s1690_s11 = smov [#allocation18]   ;;  %s1607_s30 = scalar_lea.hbm %s2126_s17, 16 }
  0xab   :  { %s153_s18 = sshll.u32 %s1690_s11, 4  ;;  %p1608_p2 = scmp.ne.s32.totalorder %s2126_s17, %s1607_s30  ;;  %s154_s18 = int_to_ptr.vmem [resolvable:$true] %s153_s18 }
  0xac   :  { %p1611_p3 = scmp.lt.u32.totalorder %s1607_s30, %s2126_s17 }
  0xae   :  { %p1613_p4 = pnand %p1611_p3, %p1608_p2 }
  0xb0   :  { %1616 = shalt.err (!%p1613_p4)
}
  0xb1   :  { %s1617_s25 = scalar_lea.vmem %s154_s18, 16  ;;  %s1621_s15 = scalar_lea.vmem %s154_s18, 32 }
  0xb2   :  { %p1618_p5 = scmp.ne.s32.totalorder %s154_s18, %s1617_s25  ;;  %p1622_p6 = scmp.lt.s32.totalorder %s154_s18, %s154_s18 }
  0xb3   :  { %p1623_p7 = scmp.lt.s32.totalorder %s1621_s15, %s1617_s25 }
  0xb5   :  { %p1624_p8 = por %p1623_p7, %p1622_p6 }
  0xb7   :  { %p1625_p9 = pnand %p1624_p8, %p1618_p5 }
  0xb9   :  { %1628 = shalt.err (!%p1625_p9)
}
  0xba   :  { %156 = dma.hbm_to_vmem [thread:$0]  %s2126_s17, 16, %s154_s18, [#allocation19]  }
  0xbb   :  { %1661 = dma.done.wait [#allocation3], 16  }
  0xbc   :  { %1662 = vsyncadd [#allocation3], 4294967280 }
  0xbd   :  { %1663 = dma.done.wait [#allocation7], 48  }
  0xbe   :  { %1664 = vsyncadd [#allocation7], 4294967248 }
  0xbf   :  { %1665 = dma.done.wait [#allocation10], 144  }
  0xc0   :  { %1666 = vsyncadd [#allocation10], 4294967152 }
  0xc1   :  { %1667 = dma.done.wait [#allocation13], 144  }
  0xc2   :  { %1668 = vsyncadd [#allocation13], 4294967152 }
  0xc3   :  { %1669 = dma.done.wait [#allocation16], 48  }
  0xc4   :  { %1670 = vsyncadd [#allocation16], 4294967248 }
  0xc5   :  { %1671 = dma.done.wait [#allocation19], 16  }
  0xc6   :  { %1672 = vsyncadd [#allocation19], 4294967280  ;;  %v1691_v0 = vmov 0.0   ;;  %vm1692_vm0 = vmmov 0   ;;  %s2138_s9 = sld [smem:[#allocation32_spill]]  ;;  %s2139_s28 = sld [smem:[#allocation30_spill]] }
  0xc7   :  { %1209 = vmatprep.subr.bf16.mxu0 %v1691_v0  ;;  %1213 = vmatprep.mubr.msk.bf16.mxu0 %vm1692_vm0, %v1691_v0  ;;  %vm213_vm1 = vcmask 261120   ;;  %v1335_v5 = vld [vmem:[%s2113_s4] sm:$0xff]   ;;  %v1336_v6 = vld [vmem:[%s2113_s4 + $0x8] sm:$0xff]   ;;  %v1337_v7 = vld [vmem:[%s2113_s4 + $0x10] sm:$0xff]   ;;  %vm304_vm2 = vcmask 523264   ;;  %s2140_s2 = sld [smem:[#allocation31_spill]] }
  0xc8   :  { %1217 = vmatprep.subr.bf16.mxu1 %v1691_v0  ;;  %1225 = vmatprep.mubr.msk.bf16.mxu1 %vm1692_vm0, %v1691_v0  ;;  %v1338_v8 = vld [vmem:[%s2113_s4 + $0x18] sm:$0xff]   ;;  %v1088_v9 = vld [vmem:[#allocation2] ss:$0 sm:$0xff]  ;;  %v1340_v22 = vld [vmem:[%s2113_s4 + $0x28] sm:$0xff]   ;;  %vm645_vm3 = vcmask 130048  }
  0xc9   :  { %1218 = vmatpush3.bf16.msra.mxu1 %v1335_v5  ;;  %v1339_v21 = vld [vmem:[%s2113_s4 + $0x20] sm:$0xff]   ;;  %v1341_v23 = vld [vmem:[%s2113_s4 + $0x30] sm:$0xff]   ;;  %v1342_v24 = vld [vmem:[%s2113_s4 + $0x38] sm:$0xff]  }
  0xca   :  { %1219 = vmatprep.subr.bf16.mxu1 %v1691_v0  ;;  %v1093_v25 = vld [vmem:[#allocation6] ss:$0 sm:$0xff]  ;;  %v1345_v39 = vld [vmem:[%s2115_s6 + $0x8] sm:$0xff]   ;;  %v1347_v41 = vld [vmem:[%s2115_s6 + $0x10] sm:$0xff]  }
  0xcb   :  { %v1343_v37 = vld [vmem:[%s2115_s6] sm:$0xff]   ;;  %v1346_v40 = vld [vmem:[%s2117_s8 + $0x8] sm:$0xff]   ;;  %v1348_v42 = vld [vmem:[%s2117_s8 + $0x10] sm:$0xff]  }
  0xcc   :  { %v1333_v1 = vld [vmem:[%s2138_s9] sm:$0xff]   ;;  %v1334_v2 = vld [vmem:[%s2138_s9 + $0x8] sm:$0xff]   ;;  %v1349_v43 = vld [vmem:[%s2115_s6 + $0x18] sm:$0xff]  }
  0xcd   :  { %1210 = vmatpush3.bf16.msra.mxu0 %v1333_v1  ;;  %v188_v3 = vld [vmem:[%s2139_s28] sm:$0xff]  ;;  %1220 = vmatpush3.bf16.msra.mxu1 %v1336_v6  ;;  %v1350_v44 = vld [vmem:[%s2117_s8 + $0x18] sm:$0xff]   ;;  %v1351_v57 = vld [vmem:[#allocation11] sm:$0xff]  }
  0xce   :  { %1211 = vmatprep.subr.bf16.mxu0 %v1691_v0  ;;  %v193_v4 = vpack.c.bf16 %v188_v3, %v188_v3  ;;  %1221 = vmatprep.subr.bf16.mxu1 %v1691_v0  ;;  %v1344_v38 = vld [vmem:[%s2117_s8] sm:$0xff]  }
  0xcf   :  { %v1108_v45 = vld [vmem:[#allocation6 + $0x1] ss:$0 sm:$0xff]  ;;  %v1115_v58 = vld [vmem:[#allocation8] ss:$0 sm:$0xff]  ;;  %v1122_v59 = vld [vmem:[#allocation9] ss:$0 sm:$0xff] }
  0xd1   :  { %1212 = vmatpush3.bf16.msra.mxu0 %v1334_v2  ;;  %1222 = vmatpush3.bf16.msra.mxu1 %v1337_v7 }
  0xd2   :  { %1229 = vmatprep.subr.bf16.mxu0 %v1691_v0  ;;  %1223 = vmatprep.subr.bf16.mxu1 %v1691_v0 }
  0xd4   :  { %1214 = vmatmul.mubr.msk.bf16.vlgmr.msra.gmra.mrb[0].mxu0 %vm213_vm1, %v193_v4 }
  0xd5   :  { %1237 = vmatprep.mubr.msk.bf16.mxu0 %vm1692_vm0, %v1691_v0  ;;  %1224 = vmatpush3.bf16.msra.mxu1 %v1338_v8 }
  0xd6   :  { %1241 = vmatprep.subr.bf16.mxu1 %v1691_v0  ;;  %1230 = vmatpush3.bf16.msra.mxu0 %v1339_v21 }
  0xd7   :  { %1231 = vmatprep.subr.bf16.mxu0 %v1691_v0 }
  0xda   :  { %1232 = vmatpush3.bf16.msra.mxu0 %v1340_v22  ;;  %v626_v22 = vld [vmem:[%s2140_s2] sm:$0xff] }
  0xdb   :  { %1233 = vmatprep.subr.bf16.mxu0 %v1691_v0 }
  0xde   :  { %1234 = vmatpush3.bf16.msra.mxu0 %v1341_v23 }
  0xdf   :  { %1235 = vmatprep.subr.bf16.mxu0 %v1691_v0 }
  0xe2   :  { %1236 = vmatpush3.bf16.msra.mxu0 %v1342_v24 }
  0xe3   :  { %1253 = vmatprep.subr.bf16.mxu0 %v1691_v0 }
 0x1a7   :  { %v251_v10 = vpop.f32.mrb[0].mxu0 }
 0x1a8   :  { %v252_v11 = vadd.f32 %v1088_v9, %v251_v10  ;;  %v1215_v12 = vpop.f32.mrb[1].mxu0 }
 0x1a9   :  { %v254_v13 = vpop.f32.mrb[2].mxu0 }
 0x1aa   :  { %v1092_v14 = vmul.f32 -1.442695, %v252_v11  ;;  %v1216_v15 = vpop.f32.mrb[3].mxu0 }
 0x1ac   :  { %1365 = vpow2.f32 %v1092_v14 }
 0x1b6   :  { %v1366_v16 = vpop.eup %1365 }
 0x1b7   :  { %v260_v17 = vadd.f32 1.0, %v1366_v16 }
 0x1b9   :  { %1367 = vrcp.f32 %v260_v17 }
 0x1c3   :  { %v1368_v18 = vpop.eup %1367 }
 0x1c4   :  { %v263_v19 = vmul.f32 %v1368_v18, %v252_v11 }
 0x1c6   :  { %v272_v20 = vpack.c.bf16 %v263_v19, %v263_v19 }
 0x1c8   :  { %1226 = vmatmul.mubr.msk.bf16.vlgmr.msra.gmra.mrb[0].mxu1 %vm304_vm2, %v272_v20 }
 0x1c9   :  { %1249 = vmatprep.mubr.msk.bf16.mxu1 %vm1692_vm0, %v1691_v0  ;;  %1242 = vmatpush3.bf16.msra.mxu1 %v1343_v37 }
 0x1ca   :  { %1243 = vmatprep.subr.bf16.mxu1 %v1691_v0 }
 0x1cd   :  { %1244 = vmatpush3.bf16.msra.mxu1 %v1345_v39 }
 0x1ce   :  { %1245 = vmatprep.subr.bf16.mxu1 %v1691_v0 }
 0x1d1   :  { %1246 = vmatpush3.bf16.msra.mxu1 %v1347_v41 }
 0x1d2   :  { %1247 = vmatprep.subr.bf16.mxu1 %v1691_v0 }
 0x1d5   :  { %1248 = vmatpush3.bf16.msra.mxu1 %v1349_v43 }
 0x1d6   :  { %1265 = vmatprep.subr.bf16.mxu1 %v1691_v0 }
 0x29b   :  { %v342_v26 = vpop.f32.mrb[0].mxu1 }
 0x29c   :  { %v343_v27 = vadd.f32 %v1093_v25, %v342_v26  ;;  %v1227_v28 = vpop.f32.mrb[1].mxu1 }
 0x29d   :  { %v345_v29 = vpop.f32.mrb[2].mxu1 }
 0x29e   :  { %v1099_v30 = vmul.f32 -1.442695, %v343_v27  ;;  %v1228_v31 = vpop.f32.mrb[3].mxu1 }
 0x2a0   :  { %1369 = vpow2.f32 %v1099_v30 }
 0x2aa   :  { %v1370_v32 = vpop.eup %1369 }
 0x2ab   :  { %v351_v33 = vadd.f32 1.0, %v1370_v32  ;;  %v1352_v32 = vld [vmem:[#allocation14] sm:$0xff]  }
 0x2ad   :  { %1371 = vrcp.f32 %v351_v33 }
 0x2b7   :  { %v1372_v34 = vpop.eup %1371 }
 0x2b8   :  { %v354_v35 = vmul.f32 %v1372_v34, %v343_v27 }
 0x2ba   :  { %v364_v36 = vpack.c.bf16 %v354_v35, %v354_v35 }
 0x2bc   :  { %1238 = vmatmul.mubr.msk.bf16.vlgmr.msra.gmra.mrb[4].mxu0 %vm304_vm2, %v364_v36 }
 0x2bd   :  { %1261 = vmatprep.mubr.msk.bf16.mxu0 %vm1692_vm0, %v1691_v0  ;;  %1254 = vmatpush3.bf16.msra.mxu0 %v1344_v38 }
 0x2be   :  { %1255 = vmatprep.subr.bf16.mxu0 %v1691_v0 }
 0x2c1   :  { %1256 = vmatpush3.bf16.msra.mxu0 %v1346_v40  ;;  %v1129_v40 = vld [vmem:[#allocation12] ss:$0 sm:$0xff] }
 0x2c2   :  { %1257 = vmatprep.subr.bf16.mxu0 %v1691_v0 }
 0x2c5   :  { %1258 = vmatpush3.bf16.msra.mxu0 %v1348_v42 }
 0x2c6   :  { %1259 = vmatprep.subr.bf16.mxu0 %v1691_v0 }
 0x2c9   :  { %1260 = vmatpush3.bf16.msra.mxu0 %v1350_v44 }
 0x2ca   :  { %1271 = vmatprep.subr.bf16.mxu0 %v1691_v0 }
 0x38f   :  { %v434_v46 = vpop.f32.mrb[4].mxu0 }
 0x390   :  { %v435_v47 = vadd.f32 %v1108_v45, %v434_v46  ;;  %v1239_v48 = vpop.f32.mrb[5].mxu0 }
 0x391   :  { %v437_v49 = vpop.f32.mrb[6].mxu0  ;;  %v1354_v48 = vld [vmem:[%s2123_s14 + $0x8] sm:$0xff]  }
 0x392   :  { %v1114_v50 = vmul.f32 -1.442695, %v435_v47  ;;  %v1240_v51 = vpop.f32.mrb[7].mxu0  ;;  %v1355_v49 = vld [vmem:[%s2123_s14 + $0x10] sm:$0xff]  }
 0x393   :  { %v1132_v51 = vld [vmem:[#allocation15] ss:$0 sm:$0xff] }
 0x394   :  { %1373 = vpow2.f32 %v1114_v50  ;;  %v1356_v50 = vld [vmem:[%s2123_s14 + $0x18] sm:$0xff]  }
 0x39e   :  { %v1374_v52 = vpop.eup %1373 }
 0x39f   :  { %v443_v53 = vadd.f32 1.0, %v1374_v52 }
 0x3a1   :  { %1375 = vrcp.f32 %v443_v53 }
 0x3ab   :  { %v1376_v54 = vpop.eup %1375 }
 0x3ac   :  { %v446_v55 = vmul.f32 %v1376_v54, %v435_v47  ;;  %v1353_v47 = vld [vmem:[%s2123_s14] sm:$0xff]  }
 0x3ae   :  { %v455_v56 = vpack.c.bf16 %v446_v55, %v446_v55 }
 0x3b0   :  { %1250 = vmatmul.mubr.msk.bf16.vlgmr.msra.gmra.mrb[4].mxu1 %vm304_vm2, %v455_v56  ;;  %1262 = vmatmul.mubr.msk.bf16.vlgmr.msra.gmra.mrb[8].mxu0 %vm304_vm2, %v455_v56 }
 0x3b1   :  { %1267 = vmatprep.mubr.msk.bf16.mxu1 %vm1692_vm0, %v1691_v0  ;;  %1273 = vmatprep.mubr.msk.bf16.mxu0 %vm1692_vm0, %v1691_v0 }
 0x3b2   :  { %1266 = vmatpush3.bf16.msra.mxu1 %v1351_v57  ;;  %1272 = vmatpush3.bf16.msra.mxu0 %v1352_v32 }
 0x3b3   :  { %1277 = vmatprep.subr.bf16.mxu1 %v1691_v0  ;;  %1289 = vmatprep.subr.bf16.mxu0 %v1691_v0 }
 0x483   :  { %v524_v60 = vpop.f32.mrb[4].mxu1  ;;  %v610_v61 = vpop.f32.mrb[8].mxu0 }
 0x484   :  { %v525_v62 = vadd.f32 %v1115_v58, %v524_v60  ;;  %v611_v63 = vadd.f32 %v1122_v59, %v610_v61  ;;  %v1251_v1 = vpop.f32.mrb[5].mxu1  ;;  %v1263_v2 = vpop.f32.mrb[9].mxu0 }
 0x485   :  { %v527_v3 = vpop.f32.mrb[6].mxu1  ;;  %v613_v4 = vpop.f32.mrb[10].mxu0  ;;  %v1358_v1 = vld [vmem:[%s2123_s14 + $0x28] sm:$0xff]   ;;  %v1359_v2 = vld [vmem:[%s2123_s14 + $0x30] sm:$0xff]  }
 0x486   :  { %v1128_v5 = vmul.f32 -1.442695, %v611_v63  ;;  %v1252_v6 = vpop.f32.mrb[7].mxu1  ;;  %v1264_v7 = vpop.f32.mrb[11].mxu0  ;;  %v1121_v8 = vmul.f32 -1.442695, %v525_v62 }
 0x487   :  { %v1360_v3 = vld [vmem:[%s2123_s14 + $0x38] sm:$0xff]  }
 0x488   :  { %1377 = vpow2.f32 %v1128_v5  ;;  %v1136_v4 = vld [vmem:[#allocation17] ss:$0 sm:$0xff] }
 0x489   :  { %1379 = vpow2.f32 %v1121_v8 }
 0x492   :  { %v1378_v9 = vpop.eup %1377 }
 0x493   :  { %v619_v10 = vadd.f32 1.0, %v1378_v9  ;;  %v1380_v11 = vpop.eup %1379 }
 0x494   :  { %v533_v12 = vadd.f32 1.0, %v1380_v11 }
 0x495   :  { %1381 = vrcp.f32 %v619_v10 }
 0x496   :  { %1383 = vrcp.f32 %v533_v12 }
 0x49f   :  { %v1382_v13 = vpop.eup %1381 }
 0x4a0   :  { %v622_v14 = vmul.f32 %v1382_v13, %v611_v63  ;;  %v1384_v18 = vpop.eup %1383  ;;  %v1357_v63 = vld [vmem:[%s2123_s14 + $0x20] sm:$0xff]  }
 0x4a1   :  { %v536_v19 = vmul.f32 %v1384_v18, %v525_v62  ;;  %v1363_v18 = vld [vmem:[%s2125_s16 + $0x10] sm:$0xff]  }
 0x4a2   :  { %v623_v15 = vmul.f32 0.5, %v622_v14  ;;  %v1036_v16 = vmul.f32 1.442695, %v622_v14 }
 0x4a3   :  { %v1038_v20 = vmul.f32 %v536_v19, %v536_v19 }
 0x4a4   :  { %v624_v17 = vmul.f32 1.442695, %v623_v15  ;;  %1385 = vpow2.f32 %v1036_v16  ;;  %v1361_v16 = vld [vmem:[%s2125_s16] sm:$0xff]  }
 0x4a6   :  { %1387 = vpow2.f32 %v624_v17  ;;  %v1362_v17 = vld [vmem:[%s2125_s16 + $0x8] sm:$0xff]  }
 0x4ae   :  { %v1386_v21 = vpop.eup %1385 }
 0x4af   :  { %v1039_v23 = vadd.f32 %v1386_v21, %v1038_v20  ;;  %v1151_v20 = vld [vmem:[#allocation17 + $0x1] ss:$0 sm:$0xff] }
 0x4b0   :  { %v1388_v24 = vpop.eup %1387 }
 0x4b1   :  { %v627_v25 = vmul.f32 %v1388_v24, %v626_v22  ;;  %v1166_v26 = vadd.f32 -1.0, %v1039_v23 }
 0x4b3   :  { %v628_v27 = vadd.f32 %v627_v25, %v536_v19  ;;  %v1041_v28 = vsub.f32 %v1166_v26, %v622_v14  ;;  %v1364_v19 = vld [vmem:[%s2125_s16 + $0x18] sm:$0xff]   ;;  %s1629_s16 = scalar_lea.hbm %s2128_s19, 16 }
 0x4b4   :  { %p1630_p10 = scmp.ne.s32.totalorder %s2128_s19, %s1629_s16  ;;  %p1633_p11 = scmp.lt.u32.totalorder %s1629_s16, %s2128_s19 }
 0x4b5   :  { %v631_v29 = vpack.c.bf16 %v628_v27, %v628_v27  ;;  %v1042_v30 = vmul.f32 0.5, %v1041_v28 }
 0x4b6   :  { %p1635_p12 = pnand %p1633_p11, %p1630_p10 }
 0x4b7   :  { %1268 = vmatmul.mubr.msk.bf16.vlgmr.msra.gmra.mrb[8].mxu1 %vm645_vm3, %v631_v29  ;;  %v1043_v31 = vsel %vm645_vm3, %v1042_v30, 0.0 }
 0x4b8   :  { %1044 = vadd.xlane.f32.xlu0 %v1043_v31  ;;  %1285 = vmatprep.mubr.msk.bf16.mxu1 %vm1692_vm0, %v1691_v0 }
 0x4b9   :  { %1278 = vmatpush3.bf16.msra.mxu1 %v1353_v47 }
 0x4ba   :  { %1279 = vmatprep.subr.bf16.mxu1 %v1691_v0 }
 0x4bd   :  { %1280 = vmatpush3.bf16.msra.mxu1 %v1354_v48 }
 0x4be   :  { %1281 = vmatprep.subr.bf16.mxu1 %v1691_v0 }
 0x4c1   :  { %1282 = vmatpush3.bf16.msra.mxu1 %v1355_v49 }
 0x4c2   :  { %1283 = vmatprep.subr.bf16.mxu1 %v1691_v0 }
 0x4c5   :  { %1284 = vmatpush3.bf16.msra.mxu1 %v1356_v50 }
 0x4c6   :  { %1301 = vmatprep.subr.bf16.mxu1 %v1691_v0 }
 0x545   :  { %v1045_v33 = vpop.xlane.xlu0 %1044 }
 0x546   :  { %v1046_v34 = vrot.slane %v1045_v33, 4 }
 0x548   :  { %v1047_v35 = vadd.f32 %v1046_v34, %v1045_v33 }
 0x54a   :  { %v1048_v36 = vrot.slane %v1047_v35, 2 }
 0x54c   :  { %v1049_v37 = vadd.f32 %v1048_v36, %v1047_v35 }
 0x54e   :  { %v1050_v38 = vrot.slane %v1049_v37, 1 }
 0x550   :  { %v1051_v39 = vadd.f32 %v1050_v38, %v1049_v37 }
 0x552   :  { %1313 = vpush %v1051_v39 }
 0x583   :  { %s1314_s13 = spop %1313 }
 0x584   :  { %1054 = sst [smem:[#allocation21]] %s1314_s13 }
 0x58a   :  { %v683_v41 = vpop.f32.mrb[8].mxu1 }
 0x58b   :  { %v2025_v42 = vadd.f32 %v1129_v40, %v683_v41  ;;  %v1269_v43 = vpop.f32.mrb[9].mxu1 }
 0x58c   :  { %v686_v44 = vpop.f32.mrb[10].mxu1 }
 0x58d   :  { %v691_v45 = vpack.c.bf16 %v2025_v42, %v2025_v42  ;;  %v1270_v46 = vpop.f32.mrb[11].mxu1 }
 0x58f   :  { %1274 = vmatmul.mubr.msk.bf16.vlgmr.msra.gmra.mrb[12].mxu0 %vm645_vm3, %v691_v45 }
 0x590   :  { %1297 = vmatprep.mubr.msk.bf16.mxu0 %vm1692_vm0, %v1691_v0  ;;  %1290 = vmatpush3.bf16.msra.mxu0 %v1357_v63 }
 0x591   :  { %1291 = vmatprep.subr.bf16.mxu0 %v1691_v0 }
 0x594   :  { %1292 = vmatpush3.bf16.msra.mxu0 %v1358_v1 }
 0x595   :  { %1293 = vmatprep.subr.bf16.mxu0 %v1691_v0 }
 0x598   :  { %1294 = vmatpush3.bf16.msra.mxu0 %v1359_v2 }
 0x599   :  { %1295 = vmatprep.subr.bf16.mxu0 %v1691_v0 }
 0x59c   :  { %1296 = vmatpush3.bf16.msra.mxu0 %v1360_v3 }
 0x662   :  { %v742_v52 = vpop.f32.mrb[12].mxu0 }
 0x663   :  { %v743_v53 = vadd.f32 %v1132_v51, %v742_v52  ;;  %v1275_v54 = vpop.f32.mrb[13].mxu0 }
 0x664   :  { %v745_v55 = vpop.f32.mrb[14].mxu0 }
 0x665   :  { %v1135_v56 = vmul.f32 -1.442695, %v743_v53  ;;  %v1276_v57 = vpop.f32.mrb[15].mxu0 }
 0x667   :  { %1389 = vpow2.f32 %v1135_v56 }
 0x671   :  { %v1390_v58 = vpop.eup %1389 }
 0x672   :  { %v751_v59 = vadd.f32 1.0, %v1390_v58 }
 0x674   :  { %1391 = vrcp.f32 %v751_v59 }
 0x67e   :  { %v1392_v60 = vpop.eup %1391 }
 0x67f   :  { %v754_v61 = vmul.f32 %v1392_v60, %v743_v53 }
 0x681   :  { %v763_v62 = vpack.c.bf16 %v754_v61, %v754_v61 }
 0x683   :  { %1286 = vmatmul.mubr.msk.bf16.vlgmr.msra.gmra.mrb[12].mxu1 %vm304_vm2, %v763_v62 }
 0x684   :  { %1309 = vmatprep.mubr.msk.bf16.mxu1 %vm1692_vm0, %v1691_v0  ;;  %1302 = vmatpush3.bf16.msra.mxu1 %v1361_v16 }
 0x685   :  { %1303 = vmatprep.subr.bf16.mxu1 %v1691_v0 }
 0x688   :  { %1304 = vmatpush3.bf16.msra.mxu1 %v1362_v17 }
 0x689   :  { %1305 = vmatprep.subr.bf16.mxu1 %v1691_v0 }
 0x68c   :  { %1306 = vmatpush3.bf16.msra.mxu1 %v1363_v18 }
 0x68d   :  { %1307 = vmatprep.subr.bf16.mxu1 %v1691_v0 }
 0x690   :  { %1308 = vmatpush3.bf16.msra.mxu1 %v1364_v19 }
 0x756   :  { %v832_v5 = vpop.f32.mrb[12].mxu1 }
 0x757   :  { %v833_v6 = vadd.f32 %v1136_v4, %v832_v5  ;;  %v1287_v7 = vpop.f32.mrb[13].mxu1 }
 0x758   :  { %v835_v8 = vpop.f32.mrb[14].mxu1 }
 0x759   :  { %v1142_v9 = vmul.f32 -1.442695, %v833_v6  ;;  %v1288_v10 = vpop.f32.mrb[15].mxu1 }
 0x75b   :  { %1393 = vpow2.f32 %v1142_v9 }
 0x765   :  { %v1394_v11 = vpop.eup %1393 }
 0x766   :  { %v841_v12 = vadd.f32 1.0, %v1394_v11 }
 0x768   :  { %1395 = vrcp.f32 %v841_v12 }
 0x772   :  { %v1396_v13 = vpop.eup %1395 }
 0x773   :  { %v844_v14 = vmul.f32 %v1396_v13, %v833_v6 }
 0x775   :  { %v854_v15 = vpack.c.bf16 %v844_v14, %v844_v14 }
 0x777   :  { %1298 = vmatmul.mubr.msk.bf16.vlgmr.msra.gmra.mrb[16].mxu0 %vm304_vm2, %v854_v15 }
 0x84a   :  { %v924_v21 = vpop.f32.mrb[16].mxu0 }
 0x84b   :  { %v925_v22 = vadd.f32 %v1151_v20, %v924_v21  ;;  %v1299_v23 = vpop.f32.mrb[17].mxu0 }
 0x84c   :  { %v927_v24 = vpop.f32.mrb[18].mxu0 }
 0x84d   :  { %v1157_v25 = vmul.f32 -1.442695, %v925_v22  ;;  %v1300_v26 = vpop.f32.mrb[19].mxu0 }
 0x84f   :  { %1397 = vpow2.f32 %v1157_v25 }
 0x859   :  { %v1398_v27 = vpop.eup %1397 }
 0x85a   :  { %v933_v28 = vadd.f32 1.0, %v1398_v27 }
 0x85c   :  { %1399 = vrcp.f32 %v933_v28 }
 0x866   :  { %v1400_v29 = vpop.eup %1399 }
 0x867   :  { %v936_v30 = vmul.f32 %v1400_v29, %v925_v22 }
 0x869   :  { %v945_v31 = vpack.c.bf16 %v936_v30, %v936_v30 }
 0x86b   :  { %1310 = vmatmul.mubr.msk.bf16.vlgmr.msra.gmra.mrb[16].mxu1 %vm304_vm2, %v945_v31 }
 0x86c   :  { %1638 = shalt.err (!%p1635_p12)
}
 0x86d   :  { %s1693_s23 = smov [#allocation21]   ;;  %v1158_v0 = vld [vmem:[#allocation18] ss:$0 sm:$0xff] }
 0x86e   :  { %1072 = dma.smem_to_hbm %s1693_s23, 16, %s2128_s19, [#allocation5]  }
 0x86f   :  { %s1694_s19 = smov [#allocation20]  }
 0x870   :  { %s1061_s24 = sshll.u32 %s1694_s19, 4  ;;  %s1062_s24 = int_to_ptr.vmem [resolvable:$true] %s1061_s24 }
 0x871   :  { %s1639_s25 = scalar_lea.vmem %s1062_s24, 128  ;;  %p1644_p0 = scmp.lt.s32.totalorder %s1062_s24, %s1062_s24 }
 0x872   :  { %p1640_p13 = scmp.ne.s32.totalorder %s1062_s24, %s1639_s25  ;;  %p1645_p1 = scmp.lt.s32.totalorder %s1639_s25, %s1639_s25 }
 0x874   :  { %p1646_p2 = por %p1645_p1, %p1644_p0 }
 0x876   :  { %p1647_p3 = pnand %p1646_p2, %p1640_p13 }
 0x93e   :  { %v1014_v32 = vpop.f32.mrb[16].mxu1 }
 0x93f   :  { %v1015_v33 = vadd.f32 %v1158_v0, %v1014_v32  ;;  %v1311_v34 = vpop.f32.mrb[17].mxu1 }
 0x940   :  { %v1017_v35 = vpop.f32.mrb[18].mxu1 }
 0x941   :  { %v1164_v36 = vmul.f32 -1.442695, %v1015_v33  ;;  %v1312_v37 = vpop.f32.mrb[19].mxu1 }
 0x943   :  { %1401 = vpow2.f32 %v1164_v36 }
 0x94d   :  { %v1402_v38 = vpop.eup %1401 }
 0x94e   :  { %v1023_v39 = vadd.f32 1.0, %v1402_v38 }
 0x950   :  { %1403 = vrcp.f32 %v1023_v39 }
 0x95a   :  { %v1404_v40 = vpop.eup %1403 }
 0x95b   :  { %v1026_v41 = vmul.f32 %v1404_v40, %v1015_v33 }
 0x95d   :  { %v1027_v43 = vadd.f32 %v1026_v41, %v2025_v42 }
 0x95f   :  { %v1165_v44 = vmul.f32 -1.442695, %v1027_v43 }
 0x961   :  { %1405 = vpow2.f32 %v1165_v44 }
 0x96b   :  { %v1406_v45 = vpop.eup %1405 }
 0x96c   :  { %v1031_v46 = vadd.f32 1.0, %v1406_v45 }
 0x96e   :  { %1407 = vrcp.f32 %v1031_v46 }
 0x978   :  { %v1408_v47 = vpop.eup %1407 }
 0x979   :  { %v1034_v48 = vmul.f32 %v1408_v47, %v1027_v43 }
 0x97b   :  { %1035 = vst.msk [vmem:[#allocation20] sm:$0xff] %vm645_vm3, %v1034_v48 }
 0x97c   :  { %1650 = shalt.err (!%p1647_p3)
}
 0x97d   :  { %s2141_s4 = sld [smem:[#allocation34_spill]] }
 0x983   :  { %s1651_s26 = scalar_lea.hbm %s2141_s4, 128 }
 0x984   :  { %p1652_p4 = scmp.ne.s32.totalorder %s2141_s4, %s1651_s26  ;;  %p1655_p5 = scmp.lt.u32.totalorder %s1651_s26, %s2141_s4 }
 0x986   :  { %p1657_p6 = pnand %p1655_p5, %p1652_p4 }
 0x988   :  { %1660 = shalt.err (!%p1657_p6)
}
 0x989   :  { %1064 = dma.vmem_to_hbm [thread:$0]  %s1062_s24, 128, %s2141_s4, [#allocation4]  }
 0x98a   :  { %1673 = dma.done.wait [#allocation4], 128  }
 0x98b   :  { %1674 = vsyncadd [#allocation4], 4294967168 }
 0x98c   :  { %1675 = dma.done.wait [#allocation5], 16  }
 0x98d   :  { %1676 = vsyncadd [#allocation5], 4294967280 }
 0x98e   :  { %1079 = sfence }
 0x98f   :  { %1080 = vsyncpa [#allocation3], 1 }
 0x990   :  { %1081 = vsyncpa [#allocation7], 1 }
 0x991   :  { %1082 = vsyncpa [#allocation10], 1 }
 0x992   :  { %1083 = vsyncpa [#allocation13], 1 }
 0x993   :  { %1084 = vsyncpa [#allocation16], 1 }
 0x994   :  { %1085 = vsyncpa [#allocation19], 1 }
 0x995   :  { %1086 = vsyncpa [#allocation4], 1 }
 0x996   :  { %1087 = vsyncpa [#allocation5], 1 }

</bundles_post_ra>
